<compile_context>
chip_gen: v6e
topology: v6e:2x2x1
jax: 0.10.0
libtpu: 0.0.40
codegen_flags: <defaults>
</compile_context>

<pallas_src>
import functools

import jax
import jax.numpy as jnp
from jax.experimental import pallas as pl
from jax.experimental.pallas import tpu as pltpu

_LANE = 128          # TPU lane width (last-dim alignment for unmasked stores)
_SUBLANE = 8         # sublane alignment for f32
_SMALL_BATCH_MAX = 256  # single-block (grid-less) path up to this many padded rows
_TILE_B = 256           # batch tile for the large-batch path (MXU-edge multiple)
_VMEM_LIMIT = 32 * 1024 * 1024  # explicit budget; fits v7x's 64 MiB physical VMEM


def _mlp_kernel(x_ref, w1_ref, b1_ref, w2_ref, b2_ref, w3_ref, b3_ref,
                o_ref, h1_ref, h2_ref):
    # Layer 1: Linear + ReLU (staged through VMEM scratch -> no vreg spills at big tiles)
    h1_ref[...] = jnp.maximum(
        jnp.dot(x_ref[...], w1_ref[...], preferred_element_type=jnp.float32)
        + b1_ref[...], 0.0)
    # Layer 2: Linear + ReLU
    h2_ref[...] = jnp.maximum(
        jnp.dot(h1_ref[...], w2_ref[...], preferred_element_type=jnp.float32)
        + b2_ref[...], 0.0)
    # Output layer: Linear + Identity (lane-dense, padded to a multiple of 128)
    o_ref[...] = (
        jnp.dot(h2_ref[...], w3_ref[...], preferred_element_type=jnp.float32)
        + b3_ref[...]).astype(o_ref.dtype)


def _round_up(n, m):
    return ((n + m - 1) // m) * m


@functools.partial(jax.jit, static_argnames=())
def mlp_forward(x, w1, b1, w2, b2, w3, b3):
    """x: (B, D_in); w_i: (D_in_i, D_out_i); b_i: (1, D_out_i). Returns (B, D_out)."""
    B, D_in = x.shape
    H1 = w1.shape[1]
    H2 = w2.shape[1]
    D_out = w3.shape[1]

    # Lane-dense output: pad last-layer width to a multiple of 128 so output
    # stores are unmasked vst instead of masked 16-lane partial stores.
    D_out_p = _round_up(D_out, _LANE)
    if D_out_p != D_out:
        w3p = jnp.pad(w3, ((0, 0), (0, D_out_p - D_out)))
        b3p = jnp.pad(b3, ((0, 0), (0, D_out_p - D_out)))
    else:
        w3p, b3p = w3, b3

    # Pad the batch: sublane multiple for the small path, tile multiple for the
    # large path (also avoids silently dropping trailing rows).
    tb = _round_up(B, _SUBLANE) if B <= _SMALL_BATCH_MAX else _TILE_B
    B_p = _round_up(B, tb)
    x_p = jnp.pad(x, ((0, B_p - B), (0, 0))) if B_p != B else x

    flops = 2 * B_p * (D_in * H1 + H1 * H2 + H2 * D_out_p)
    bytes_accessed = 4 * (x_p.size + w1.size + b1.size + w2.size + b2.size
                          + w3p.size + b3p.size + B_p * D_out_p)
    cost = pl.CostEstimate(flops=flops, transcendentals=0,
                           bytes_accessed=bytes_accessed)

    scratch = [pltpu.VMEM((tb, H1), jnp.float32),
               pltpu.VMEM((tb, H2), jnp.float32)]

    if B_p == tb:
        # Small / latency-bound case: a single block, no grid, no pipelining
        # machinery, every operand resident in VMEM.
        out_p = pl.pallas_call(
            _mlp_kernel,
            out_shape=jax.ShapeDtypeStruct((B_p, D_out_p), x.dtype),
            in_specs=[pl.BlockSpec(memory_space=pltpu.MemorySpace.VMEM)] * 7,
            out_specs=pl.BlockSpec(memory_space=pltpu.MemorySpace.VMEM),
            scratch_shapes=scratch,
            cost_estimate=cost,
            compiler_params=pltpu.CompilerParams(vmem_limit_bytes=_VMEM_LIMIT),
        )(x_p, w1, b1, w2, b2, w3p, b3p)
    else:
        # Scaled-batch case: tile the batch; weights/biases use a constant block
        # index so they stay VMEM-resident across grid steps; batch axis is
        # parallel (megacore / dual-TC on v7x) and x/out tiles pipeline.
        full = lambda a: pl.BlockSpec(a.shape, lambda i: (0, 0))
        out_p = pl.pallas_call(
            _mlp_kernel,
            out_shape=jax.ShapeDtypeStruct((B_p, D_out_p), x.dtype),
            grid=(B_p // tb,),
            in_specs=[
                pl.BlockSpec((tb, D_in), lambda i: (i, 0)),   # x batch tile
                full(w1), full(b1),
                full(w2), full(b2),
                full(w3p), full(b3p),
            ],
            out_specs=pl.BlockSpec((tb, D_out_p), lambda i: (i, 0)),
            scratch_shapes=scratch,
            cost_estimate=cost,
            compiler_params=pltpu.CompilerParams(
                dimension_semantics=("parallel",),
                vmem_limit_bytes=_VMEM_LIMIT),
        )(x_p, w1, b1, w2, b2, w3p, b3p)

    # Strip batch/lane padding.
    return out_p[:B, :D_out]


def init_params(key, input_dim, output_dim, hidden_dims):
    """Deterministic init; shapes match nn.Linear layers, weights pre-transposed to (in, out)."""
    dims = [input_dim] + list(hidden_dims) + [output_dim]
    params = []
    for i in range(len(dims) - 1):
        key, wk = jax.random.split(key)
        d_in, d_out = dims[i], dims[i + 1]
        w = jax.random.normal(wk, (d_in, d_out), jnp.float32) / jnp.sqrt(d_in)
        b = jnp.zeros((1, d_out), jnp.float32)
        params += [w, b]
    return params


def mlp_reference(x, w1, b1, w2, b2, w3, b3):
    h1 = jnp.maximum(x @ w1 + b1, 0.0)
    h2 = jnp.maximum(h1 @ w2 + b2, 0.0)
    return h2 @ w3 + b3


if __name__ == "__main__":
    # Shapes consistent with MLP(input_dim=32, output_dim=16, hidden_dims=[256, 256],
    # activation=ReLU, output_activation=Identity, use_ln=False).
    B, D_IN, D_OUT = 8, 32, 16
    HIDDEN = [256, 256]

    key = jax.random.PRNGKey(0)
    key, xk = jax.random.split(key)
    x = jax.random.normal(xk, (B, D_IN), jnp.float32)

    w1, b1, w2, b2, w3, b3 = init_params(key, D_IN, D_OUT, HIDDEN)

    out = mlp_forward(x, w1, b1, w2, b2, w3, b3)
    out = jax.block_until_ready(out)

    ref = mlp_reference(x, w1, b1, w2, b2, w3, b3)
    assert out.shape == (B, D_OUT)
    assert jnp.allclose(out, ref, atol=1e-5, rtol=1e-5)

    print("KERNEL_OK")
</pallas_src>

<mosaic_0001>
module attributes {stable_mosaic.version = 11 : i64} {
  func.func @_mlp_kernel(%arg0: memref<8x32xf32, #tpu.memory_space<vmem>>, %arg1: memref<32x256xf32, #tpu.memory_space<vmem>>, %arg2: memref<1x256xf32, #tpu.memory_space<vmem>>, %arg3: memref<256x256xf32, #tpu.memory_space<vmem>>, %arg4: memref<1x256xf32, #tpu.memory_space<vmem>>, %arg5: memref<256x128xf32, #tpu.memory_space<vmem>>, %arg6: memref<1x128xf32, #tpu.memory_space<vmem>>, %arg7: memref<8x128xf32, #tpu.memory_space<vmem>>, %arg8: memref<8x256xf32, #tpu.memory_space<vmem>>, %arg9: memref<8x256xf32, #tpu.memory_space<vmem>>) attributes {dimension_semantics = [], scalar_prefetch = 0 : i64, scratch_operands = 2 : i64, tpu.core_type = #tpu.core_type<tc>} {
    %c0 = arith.constant 0 : index
    %c0_0 = arith.constant 0 : index
    %0 = vector.load %arg0[%c0, %c0_0] : memref<8x32xf32, #tpu.memory_space<vmem>>, vector<8x32xf32>
    %c0_1 = arith.constant 0 : index
    %c0_2 = arith.constant 0 : index
    %1 = vector.load %arg1[%c0_1, %c0_2] : memref<32x256xf32, #tpu.memory_space<vmem>>, vector<32x256xf32>
    %cst = arith.constant dense<0.000000e+00> : vector<8x256xf32>
    %2 = tpu.matmul %0, %1, %cst {dimension_numbers = #tpu.dot_dimension_numbers<[1], [0], [0], [1], [0, 0, 1, 1], [], []>} : vector<8x32xf32>, vector<32x256xf32>, vector<8x256xf32> -> vector<8x256xf32>
    %c0_3 = arith.constant 0 : index
    %c0_4 = arith.constant 0 : index
    %3 = vector.load %arg2[%c0_3, %c0_4] : memref<1x256xf32, #tpu.memory_space<vmem>>, vector<1x256xf32>
    %4 = vector.broadcast %3 : vector<1x256xf32> to vector<8x256xf32>
    %5 = arith.addf %2, %4 : vector<8x256xf32>
    %cst_5 = arith.constant 0.000000e+00 : f32
    %6 = vector.broadcast %cst_5 : f32 to vector<8x256xf32>
    %7 = arith.maximumf %5, %6 : vector<8x256xf32>
    %c0_6 = arith.constant 0 : index
    %c0_7 = arith.constant 0 : index
    %8 = vector.load %arg8[%c0_6, %c0_7] : memref<8x256xf32, #tpu.memory_space<vmem>>, vector<8x256xf32>
    tpu.vector_store %arg8[%c0_6, %c0_7], %7 {strides = array<i32>} : memref<8x256xf32, #tpu.memory_space<vmem>>, vector<8x256xf32>,
    %c0_8 = arith.constant 0 : index
    %c0_9 = arith.constant 0 : index
    %9 = vector.load %arg8[%c0_8, %c0_9] : memref<8x256xf32, #tpu.memory_space<vmem>>, vector<8x256xf32>
    %c0_10 = arith.constant 0 : index
    %c0_11 = arith.constant 0 : index
    %10 = vector.load %arg3[%c0_10, %c0_11] : memref<256x256xf32, #tpu.memory_space<vmem>>, vector<256x256xf32>
    %cst_12 = arith.constant dense<0.000000e+00> : vector<8x256xf32>
    %11 = tpu.matmul %9, %10, %cst_12 {dimension_numbers = #tpu.dot_dimension_numbers<[1], [0], [0], [1], [0, 0, 1, 1], [], []>} : vector<8x256xf32>, vector<256x256xf32>, vector<8x256xf32> -> vector<8x256xf32>
    %c0_13 = arith.constant 0 : index
    %c0_14 = arith.constant 0 : index
    %12 = vector.load %arg4[%c0_13, %c0_14] : memref<1x256xf32, #tpu.memory_space<vmem>>, vector<1x256xf32>
    %13 = vector.broadcast %12 : vector<1x256xf32> to vector<8x256xf32>
    %14 = arith.addf %11, %13 : vector<8x256xf32>
    %cst_15 = arith.constant 0.000000e+00 : f32
    %15 = vector.broadcast %cst_15 : f32 to vector<8x256xf32>
    %16 = arith.maximumf %14, %15 : vector<8x256xf32>
    %c0_16 = arith.constant 0 : index
    %c0_17 = arith.constant 0 : index
    %17 = vector.load %arg9[%c0_16, %c0_17] : memref<8x256xf32, #tpu.memory_space<vmem>>, vector<8x256xf32>
    tpu.vector_store %arg9[%c0_16, %c0_17], %16 {strides = array<i32>} : memref<8x256xf32, #tpu.memory_space<vmem>>, vector<8x256xf32>,
    %c0_18 = arith.constant 0 : index
    %c0_19 = arith.constant 0 : index
    %18 = vector.load %arg9[%c0_18, %c0_19] : memref<8x256xf32, #tpu.memory_space<vmem>>, vector<8x256xf32>
    %c0_20 = arith.constant 0 : index
    %c0_21 = arith.constant 0 : index
    %19 = vector.load %arg5[%c0_20, %c0_21] : memref<256x128xf32, #tpu.memory_space<vmem>>, vector<256x128xf32>
    %cst_22 = arith.constant dense<0.000000e+00> : vector<8x128xf32>
    %20 = tpu.matmul %18, %19, %cst_22 {dimension_numbers = #tpu.dot_dimension_numbers<[1], [0], [0], [1], [0, 0, 1, 1], [], []>} : vector<8x256xf32>, vector<256x128xf32>, vector<8x128xf32> -> vector<8x128xf32>
    %c0_23 = arith.constant 0 : index
    %c0_24 = arith.constant 0 : index
    %21 = vector.load %arg6[%c0_23, %c0_24] : memref<1x128xf32, #tpu.memory_space<vmem>>, vector<1x128xf32>
    %22 = vector.broadcast %21 : vector<1x128xf32> to vector<8x128xf32>
    %23 = arith.addf %20, %22 : vector<8x128xf32>
    %c0_25 = arith.constant 0 : index
    %c0_26 = arith.constant 0 : index
    %24 = vector.load %arg7[%c0_25, %c0_26] : memref<8x128xf32, #tpu.memory_space<vmem>>, vector<8x128xf32>
    tpu.vector_store %arg7[%c0_25, %c0_26], %23 {strides = array<i32>} : memref<8x128xf32, #tpu.memory_space<vmem>>, vector<8x128xf32>,
    return
  }
}

</mosaic_0001>

<bundles_post_ra>
// kernel: mlp_forward.1
= control target key start
LH: loop header
LB: loop body
LE: loop exit
PB: predicated region body
PF: predicated region fallthrough
CT: control target
= control target key end

     0   :  { %v467_v4 = vmov 0.0   ;;  %vm48_vm0 = vcmask 261120   ;;  %s836_s0 = inlined_call_operand.vmem [shape: f32[8,32], index: 0, kind: input, shape index: {}]   ;;  %s837_s1 = inlined_call_operand.vmem [shape: f32[32,256], index: 1, kind: input, shape index: {}]   ;;  %s838_s2 = inlined_call_operand.vmem [shape: f32[1,256], index: 2, kind: input, shape index: {}]   ;;  %s839_s3 = inlined_call_operand.vmem [shape: f32[256,256], index: 3, kind: input, shape index: {}]   ;;  %s840_s4 = inlined_call_operand.vmem [shape: f32[1,256], index: 4, kind: input, shape index: {}]   ;;  %s841_s5 = inlined_call_operand.vmem [shape: f32[256,128], index: 5, kind: input, shape index: {}]   ;;  %s842_s6 = inlined_call_operand.vmem [shape: f32[1,128], index: 6, kind: input, shape index: {}]   ;;  %s843_s7 = inlined_call_operand.hbm [shape: f32[8,128], index: 7, kind: output, shape index: {}]  }
   0x1   :  { %v35_v0 = vld [vmem:[%s837_s1 + $0x38] sm:$0xff]  ;;  %v34_v1 = vld [vmem:[%s837_s1 + $0x30] sm:$0xff]  ;;  %v33_v2 = vld [vmem:[%s837_s1 + $0x28] sm:$0xff]  ;;  %116 = vmatprep.mubr.f32.mxu0 %v467_v4 }
   0x2   :  { %76 = vmatprep.subr.mxu0 %v35_v0  ;;  %v32_v3 = vld [vmem:[%s837_s1 + $0x20] sm:$0xff]  ;;  %v31_v5 = vld [vmem:[%s837_s1 + $0x18] sm:$0xff]  ;;  %v30_v6 = vld [vmem:[%s837_s1 + $0x10] sm:$0xff] }
   0x3   :  { %77 = vmatpush1.msra.mxu0 %v34_v1  ;;  %v160_v7 = vld [vmem:[%s839_s3 + $0xf8] sm:$0xff]  ;;  %v159_v8 = vld [vmem:[%s839_s3 + $0xf0] sm:$0xff]  ;;  %v158_v9 = vld [vmem:[%s839_s3 + $0xe8] sm:$0xff] }
   0x4   :  { %78 = vmatprep.subr.mxu0 %v33_v2  ;;  %v29_v10 = vld [vmem:[%s837_s1 + $0x8] sm:$0xff]  ;;  %205 = vmatprep.subr.mxu1 %v160_v7  ;;  %v157_v11 = vld [vmem:[%s839_s3 + $0xe0] sm:$0xff]  ;;  %v156_v13 = vld [vmem:[%s839_s3 + $0xd8] sm:$0xff] }
   0x5   :  { %79 = vmatpush1.msra.mxu0 %v32_v3  ;;  %v28_v12 = vld [vmem:[%s837_s1] sm:$0xff]  ;;  %206 = vmatpush1.msra.mxu1 %v159_v8  ;;  %v155_v15 = vld [vmem:[%s839_s3 + $0xd0] sm:$0xff]  ;;  %v154_v16 = vld [vmem:[%s839_s3 + $0xc8] sm:$0xff] }
   0x6   :  { %80 = vmatprep.subr.mxu0 %v31_v5  ;;  %v27_v14 = vld [vmem:[%s836_s0] sm:$0xff]  ;;  %207 = vmatprep.subr.mxu1 %v158_v9  ;;  %v152_v18 = vld [vmem:[%s839_s3 + $0xb8] sm:$0xff]  ;;  %v151_v19 = vld [vmem:[%s839_s3 + $0xb0] sm:$0xff] }
   0x7   :  { %81 = vmatpush1.msra.mxu0 %v30_v6  ;;  %208 = vmatpush1.msra.mxu1 %v157_v11  ;;  %v153_v17 = vld [vmem:[%s839_s3 + $0xc0] sm:$0xff]  ;;  %v150_v20 = vld [vmem:[%s839_s3 + $0xa8] sm:$0xff]  ;;  %v148_v22 = vld [vmem:[%s839_s3 + $0x98] sm:$0xff] }
   0x8   :  { %82 = vmatprep.subr.mxu0 %v29_v10  ;;  %209 = vmatprep.subr.mxu1 %v156_v13  ;;  %v149_v21 = vld [vmem:[%s839_s3 + $0xa0] sm:$0xff]  ;;  %v147_v23 = vld [vmem:[%s839_s3 + $0x90] sm:$0xff]  ;;  %v146_v24 = vld [vmem:[%s839_s3 + $0x88] sm:$0xff] }
   0x9   :  { %83 = vmatpush1.msra.mxu0 %v28_v12  ;;  %210 = vmatpush1.msra.mxu1 %v155_v15  ;;  %v145_v25 = vld [vmem:[%s839_s3 + $0x80] sm:$0xff]  ;;  %v144_v26 = vld [vmem:[%s839_s3 + $0x78] sm:$0xff]  ;;  %v143_v27 = vld [vmem:[%s839_s3 + $0x70] sm:$0xff] }
   0xa   :  { %406 = vmatmul.mubr.msk.f32.vlgmr.msra.gmra.mxu0 %vm48_vm0, %v27_v14  ;;  %211 = vmatprep.subr.mxu1 %v154_v16  ;;  %v142_v28 = vld [vmem:[%s839_s3 + $0x68] sm:$0xff]  ;;  %v141_v29 = vld [vmem:[%s839_s3 + $0x60] sm:$0xff]  ;;  %v140_v30 = vld [vmem:[%s839_s3 + $0x58] sm:$0xff] }
   0xb   :  { %212 = vmatpush1.msra.mxu1 %v153_v17  ;;  %v139_v31 = vld [vmem:[%s839_s3 + $0x50] sm:$0xff] }
   0xc   :  { %213 = vmatprep.subr.mxu1 %v152_v18 }
   0xd   :  { %214 = vmatpush1.msra.mxu1 %v151_v19 }
   0xe   :  { %215 = vmatprep.subr.mxu1 %v150_v20 }
   0xf   :  { %216 = vmatpush1.msra.mxu1 %v149_v21 }
  0x10   :  { %217 = vmatprep.subr.mxu1 %v148_v22 }
  0x11   :  { %218 = vmatpush1.msra.mxu1 %v147_v23 }
  0x12   :  { %219 = vmatprep.subr.mxu1 %v146_v24 }
  0x13   :  { %220 = vmatpush1.msra.mxu1 %v145_v25 }
  0x14   :  { %221 = vmatprep.subr.mxu1 %v144_v26 }
  0x15   :  { %222 = vmatpush1.msra.mxu1 %v143_v27 }
  0x16   :  { %223 = vmatprep.subr.mxu1 %v142_v28 }
  0x17   :  { %12 = vsyncpa [#allocation5], 0  ;;  %224 = vmatpush1.msra.mxu1 %v141_v29  ;;  %v138_v32 = vld [vmem:[%s839_s3 + $0x48] sm:$0xff]  ;;  %v137_v33 = vld [vmem:[%s839_s3 + $0x40] sm:$0xff]  ;;  %s468_s12 = smov [#allocation4]  }
  0x18   :  { %225 = vmatprep.subr.mxu1 %v140_v30  ;;  %v136_v34 = vld [vmem:[%s839_s3 + $0x38] sm:$0xff]  ;;  %v135_v35 = vld [vmem:[%s839_s3 + $0x30] sm:$0xff]  ;;  %v134_v36 = vld [vmem:[%s839_s3 + $0x28] sm:$0xff]  ;;  %s398_s13 = sshll.u32 %s468_s12, 4  ;;  %s399_s13 = int_to_ptr.vmem [resolvable:$true] %s398_s13 }
  0x19   :  { %226 = vmatpush1.msra.mxu1 %v139_v31  ;;  %v133_v37 = vld [vmem:[%s839_s3 + $0x20] sm:$0xff]  ;;  %v132_v38 = vld [vmem:[%s839_s3 + $0x18] sm:$0xff]  ;;  %v131_v39 = vld [vmem:[%s839_s3 + $0x10] sm:$0xff]  ;;  %p450_p1 = scmp.lt.s32.totalorder %s399_s13, %s399_s13 }
  0x1a   :  { %227 = vmatprep.subr.mxu1 %v138_v32  ;;  %v130_v40 = vld [vmem:[%s839_s3 + $0x8] sm:$0xff]  ;;  %v129_v41 = vld [vmem:[%s839_s3] sm:$0xff]  ;;  %v192_v42 = vld [vmem:[%s839_s3 + $0x1f8] sm:$0xff] }
  0x1b   :  { %228 = vmatpush1.msra.mxu1 %v137_v33  ;;  %v191_v43 = vld [vmem:[%s839_s3 + $0x1f0] sm:$0xff]  ;;  %v190_v44 = vld [vmem:[%s839_s3 + $0x1e8] sm:$0xff]  ;;  %v189_v45 = vld [vmem:[%s839_s3 + $0x1e0] sm:$0xff] }
  0x1c   :  { %229 = vmatprep.subr.mxu1 %v136_v34  ;;  %v188_v46 = vld [vmem:[%s839_s3 + $0x1d8] sm:$0xff]  ;;  %v187_v47 = vld [vmem:[%s839_s3 + $0x1d0] sm:$0xff]  ;;  %v186_v48 = vld [vmem:[%s839_s3 + $0x1c8] sm:$0xff]  ;;  %v38_v34 = vlaneseq }
  0x1d   :  { %230 = vmatpush1.msra.mxu1 %v135_v35  ;;  %v185_v49 = vld [vmem:[%s839_s3 + $0x1c0] sm:$0xff]  ;;  %v184_v50 = vld [vmem:[%s839_s3 + $0x1b8] sm:$0xff]  ;;  %v183_v51 = vld [vmem:[%s839_s3 + $0x1b0] sm:$0xff] }
  0x1e   :  { %231 = vmatprep.subr.mxu1 %v134_v36  ;;  %v182_v52 = vld [vmem:[%s839_s3 + $0x1a8] sm:$0xff]  ;;  %v181_v53 = vld [vmem:[%s839_s3 + $0x1a0] sm:$0xff]  ;;  %v180_v54 = vld [vmem:[%s839_s3 + $0x198] sm:$0xff]  ;;  %v39_v35 = vshrl.u32 %v38_v34, 7 }
  0x1f   :  { %232 = vmatpush1.msra.mxu1 %v133_v37  ;;  %v179_v55 = vld [vmem:[%s839_s3 + $0x190] sm:$0xff]  ;;  %v178_v56 = vld [vmem:[%s839_s3 + $0x188] sm:$0xff]  ;;  %v177_v57 = vld [vmem:[%s839_s3 + $0x180] sm:$0xff] }
  0x20   :  { %233 = vmatprep.subr.mxu1 %v132_v38  ;;  %v176_v58 = vld [vmem:[%s839_s3 + $0x178] sm:$0xff]  ;;  %v175_v59 = vld [vmem:[%s839_s3 + $0x170] sm:$0xff]  ;;  %v174_v60 = vld [vmem:[%s839_s3 + $0x168] sm:$0xff]  ;;  %v40_v36 = vsub.s32 0, %v39_v35  ;;  %v44_v38 = vsub.s32 1, %v39_v35 }
  0x21   :  { %234 = vmatpush1.msra.mxu1 %v131_v39  ;;  %v173_v61 = vld [vmem:[%s839_s3 + $0x160] sm:$0xff]  ;;  %v172_v62 = vld [vmem:[%s839_s3 + $0x158] sm:$0xff]  ;;  %v171_v63 = vld [vmem:[%s839_s3 + $0x150] sm:$0xff] }
  0x22   :  { %235 = vmatprep.subr.mxu1 %v130_v40  ;;  %v170_v0 = vld [vmem:[%s839_s3 + $0x148] sm:$0xff]  ;;  %v169_v1 = vld [vmem:[%s839_s3 + $0x140] sm:$0xff]  ;;  %v168_v2 = vld [vmem:[%s839_s3 + $0x138] sm:$0xff] }
  0x23   :  { %236 = vmatpush1.msra.mxu1 %v129_v41  ;;  %v167_v3 = vld [vmem:[%s839_s3 + $0x130] sm:$0xff]  ;;  %v166_v4 = vld [vmem:[%s839_s3 + $0x128] sm:$0xff]  ;;  %v165_v5 = vld [vmem:[%s839_s3 + $0x120] sm:$0xff] }
  0x24   :  { %237 = vmatprep.subr.mxu1 %v192_v42  ;;  %v164_v6 = vld [vmem:[%s839_s3 + $0x118] sm:$0xff]  ;;  %v163_v7 = vld [vmem:[%s839_s3 + $0x110] sm:$0xff]  ;;  %v162_v8 = vld [vmem:[%s839_s3 + $0x108] sm:$0xff] }
  0x25   :  { %238 = vmatpush2.msra.mxu1 %v191_v43  ;;  %v161_v9 = vld [vmem:[%s839_s3 + $0x100] sm:$0xff]  ;;  %v313_v10 = vld [vmem:[%s841_s5 + $0xf8] sm:$0xff]  ;;  %v312_v12 = vld [vmem:[%s841_s5 + $0xf0] sm:$0xff] }
  0x26   :  { %239 = vmatprep.subr.mxu1 %v190_v44  ;;  %v297_v11 = vld [vmem:[%s841_s5 + $0x78] sm:$0xff]  ;;  %408 = vmatprep.subr.mxu0 %v313_v10  ;;  %v296_v13 = vld [vmem:[%s841_s5 + $0x70] sm:$0xff]  ;;  %v311_v14 = vld [vmem:[%s841_s5 + $0xe8] sm:$0xff] }
  0x27   :  { %240 = vmatpush2.msra.mxu1 %v189_v45  ;;  %409 = vmatpush3.msra.mxu0 %v297_v11  ;;  %v295_v15 = vld [vmem:[%s841_s5 + $0x68] sm:$0xff]  ;;  %v310_v16 = vld [vmem:[%s841_s5 + $0xe0] sm:$0xff]  ;;  %v309_v18 = vld [vmem:[%s841_s5 + $0xd8] sm:$0xff] }
  0x28   :  { %241 = vmatprep.subr.mxu1 %v188_v46  ;;  %410 = vmatprep.subr.mxu0 %v312_v12  ;;  %v294_v17 = vld [vmem:[%s841_s5 + $0x60] sm:$0xff]  ;;  %v293_v19 = vld [vmem:[%s841_s5 + $0x58] sm:$0xff]  ;;  %v308_v20 = vld [vmem:[%s841_s5 + $0xd0] sm:$0xff] }
  0x29   :  { %242 = vmatpush2.msra.mxu1 %v187_v47  ;;  %411 = vmatpush3.msra.mxu0 %v296_v13  ;;  %v292_v21 = vld [vmem:[%s841_s5 + $0x50] sm:$0xff]  ;;  %v307_v22 = vld [vmem:[%s841_s5 + $0xc8] sm:$0xff]  ;;  %v306_v24 = vld [vmem:[%s841_s5 + $0xc0] sm:$0xff] }
  0x2a   :  { %243 = vmatprep.subr.mxu1 %v186_v48  ;;  %412 = vmatprep.subr.mxu0 %v311_v14  ;;  %v291_v23 = vld [vmem:[%s841_s5 + $0x48] sm:$0xff]  ;;  %v290_v25 = vld [vmem:[%s841_s5 + $0x40] sm:$0xff]  ;;  %v305_v26 = vld [vmem:[%s841_s5 + $0xb8] sm:$0xff] }
  0x2b   :  { %244 = vmatpush2.msra.mxu1 %v185_v49  ;;  %413 = vmatpush3.msra.mxu0 %v295_v15  ;;  %v289_v27 = vld [vmem:[%s841_s5 + $0x38] sm:$0xff]  ;;  %v304_v28 = vld [vmem:[%s841_s5 + $0xb0] sm:$0xff]  ;;  %v303_v30 = vld [vmem:[%s841_s5 + $0xa8] sm:$0xff] }
  0x2c   :  { %245 = vmatprep.subr.mxu1 %v184_v50  ;;  %414 = vmatprep.subr.mxu0 %v310_v16  ;;  %v288_v29 = vld [vmem:[%s841_s5 + $0x30] sm:$0xff]  ;;  %v287_v31 = vld [vmem:[%s841_s5 + $0x28] sm:$0xff]  ;;  %v302_v32 = vld [vmem:[%s841_s5 + $0xa0] sm:$0xff] }
  0x2d   :  { %246 = vmatpush2.msra.mxu1 %v183_v51  ;;  %415 = vmatpush3.msra.mxu0 %v294_v17  ;;  %v286_v33 = vld [vmem:[%s841_s5 + $0x20] sm:$0xff]  ;;  %v301_v47 = vld [vmem:[%s841_s5 + $0x98] sm:$0xff]  ;;  %v300_v49 = vld [vmem:[%s841_s5 + $0x90] sm:$0xff] }
  0x2e   :  { %247 = vmatprep.subr.mxu1 %v182_v52  ;;  %416 = vmatprep.subr.mxu0 %v309_v18  ;;  %v36_v37 = vld [vmem:[%s838_s2] sm:$0x3]  ;;  %v285_v48 = vld [vmem:[%s841_s5 + $0x18] sm:$0xff]  ;;  %v284_v50 = vld [vmem:[%s841_s5 + $0x10] sm:$0xff] }
  0x2f   :  { %248 = vmatpush2.msra.mxu1 %v181_v53  ;;  %417 = vmatpush3.msra.mxu0 %v293_v19  ;;  %v41_v39 = vrot.slane %v36_v37, %v40_v36  ;;  %v45_v40 = vrot.slane %v36_v37, %v44_v38  ;;  %v299_v51 = vld [vmem:[%s841_s5 + $0x88] sm:$0xff]  ;;  %v298_v53 = vld [vmem:[%s841_s5 + $0x80] sm:$0xff] }
  0x30   :  { %249 = vmatprep.subr.mxu1 %v180_v54  ;;  %418 = vmatprep.subr.mxu0 %v308_v20  ;;  %v283_v52 = vld [vmem:[%s841_s5 + $0x8] sm:$0xff]  ;;  %v282_v54 = vld [vmem:[%s841_s5] sm:$0xff] }
  0x31   :  { %250 = vmatpush2.msra.mxu1 %v179_v55  ;;  %419 = vmatpush3.msra.mxu0 %v292_v21  ;;  %v193_v55 = vld [vmem:[%s840_s4] sm:$0x3]  ;;  %s445_s4 = scalar_lea.vmem %s399_s13, 128 }
  0x32   :  { %251 = vmatprep.subr.mxu1 %v178_v56  ;;  %420 = vmatprep.subr.mxu0 %v307_v22  ;;  %v198_v56 = vrot.slane %v193_v55, %v40_v36  ;;  %p446_p0 = scmp.ne.s32.totalorder %s399_s13, %s445_s4  ;;  %p451_p2 = scmp.lt.s32.totalorder %s445_s4, %s445_s4 }
  0x33   :  { %252 = vmatpush2.msra.mxu1 %v177_v57  ;;  %421 = vmatpush3.msra.mxu0 %v291_v23  ;;  %v202_v57 = vrot.slane %v193_v55, %v44_v38 }
  0x34   :  { %253 = vmatprep.subr.mxu1 %v176_v58  ;;  %422 = vmatprep.subr.mxu0 %v306_v24  ;;  %p452_p3 = por %p451_p2, %p450_p1 }
  0x35   :  { %254 = vmatpush2.msra.mxu1 %v175_v59  ;;  %423 = vmatpush3.msra.mxu0 %v290_v25 }
  0x36   :  { %255 = vmatprep.subr.mxu1 %v174_v60  ;;  %424 = vmatprep.subr.mxu0 %v305_v26  ;;  %p453_p4 = pnand %p452_p3, %p446_p0 }
  0x37   :  { %256 = vmatpush2.msra.mxu1 %v173_v61  ;;  %425 = vmatpush3.msra.mxu0 %v289_v27 }
  0x38   :  { %257 = vmatprep.subr.mxu1 %v172_v62  ;;  %426 = vmatprep.subr.mxu0 %v304_v28 }
  0x39   :  { %258 = vmatpush2.msra.mxu1 %v171_v63  ;;  %427 = vmatpush3.msra.mxu0 %v288_v29 }
  0x3a   :  { %259 = vmatprep.subr.mxu1 %v170_v0  ;;  %428 = vmatprep.subr.mxu0 %v303_v30 }
  0x3b   :  { %260 = vmatpush2.msra.mxu1 %v169_v1  ;;  %429 = vmatpush3.msra.mxu0 %v287_v31 }
  0x3c   :  { %261 = vmatprep.subr.mxu1 %v168_v2  ;;  %430 = vmatprep.subr.mxu0 %v302_v32  ;;  %v407_v2 = vld [vmem:[%s842_s6] ss:$0 sm:$0xff] }
  0x3d   :  { %262 = vmatpush2.msra.mxu1 %v167_v3  ;;  %431 = vmatpush3.msra.mxu0 %v286_v33 }
  0x3e   :  { %263 = vmatprep.subr.mxu1 %v166_v4  ;;  %432 = vmatprep.subr.mxu0 %v301_v47 }
  0x3f   :  { %264 = vmatpush2.msra.mxu1 %v165_v5  ;;  %433 = vmatpush3.msra.mxu0 %v285_v48 }
  0x40   :  { %265 = vmatprep.subr.mxu1 %v164_v6  ;;  %434 = vmatprep.subr.mxu0 %v300_v49 }
  0x41   :  { %266 = vmatpush2.msra.mxu1 %v163_v7  ;;  %435 = vmatpush3.msra.mxu0 %v284_v50 }
  0x42   :  { %267 = vmatprep.subr.mxu1 %v162_v8  ;;  %436 = vmatprep.subr.mxu0 %v299_v51 }
  0x43   :  { %268 = vmatpush2.msra.mxu1 %v161_v9  ;;  %437 = vmatpush3.msra.mxu0 %v283_v52 }
  0x44   :  { %438 = vmatprep.subr.mxu0 %v298_v53 }
  0x45   :  { %439 = vmatpush3.msra.mxu0 %v282_v54 }
  0xca   :  { %v118_v41 = vpop.f32.mrf.mxu0 }
  0xcb   :  { %v119_v42 = vadd.f32 %v118_v41, %v41_v39 }
  0xcc   :  { %v120_v43 = vpop.f32.mrf.mxu0 }
  0xcd   :  { %v121_v44 = vadd.f32 %v120_v43, %v45_v40  ;;  %v123_v46 = vmax.f32 %v119_v42, 0.0 }
  0xcf   :  { %v124_v45 = vmax.f32 %v121_v44, 0.0 }
  0xd1   :  { %269 = vmatprep.mubr.f32.mxu1 %v124_v45 }
  0xd2   :  { %270 = vmatmul.mubr.f32.vlgmr.msra.gmra.mxu1 %v123_v46 }
 0x192   :  { %v271_v58 = vpop.f32.mrf.mxu1 }
 0x193   :  { %v272_v59 = vadd.f32 %v271_v58, %v198_v56 }
 0x194   :  { %v273_v60 = vpop.f32.mrf.mxu1 }
 0x195   :  { %v274_v61 = vadd.f32 %v273_v60, %v202_v57  ;;  %v276_v63 = vmax.f32 %v272_v59, 0.0 }
 0x197   :  { %v277_v62 = vmax.f32 %v274_v61, 0.0 }
 0x199   :  { %385 = vmatprep.mubr.f32.mxu0 %v277_v62 }
 0x19a   :  { %386 = vmatmul.mubr.f32.vlgmr.msra.gmra.mxu0 %v276_v63 }
 0x25a   :  { %v440_v0 = vpop.f32.mrf.mxu0 }
 0x25c   :  { %v441_v1 = vpop.f32.mrf.mxu0 }
 0x25d   :  { %v442_v3 = vadd.f32 %v441_v1, %v440_v0 }
 0x25f   :  { %v388_v4 = vadd.f32 %v442_v3, %v407_v2 }
 0x261   :  { %391 = vst [vmem:[#allocation4] sm:$0xff] %v388_v4 }
 0x262   :  { %456 = shalt.err (!%p453_p4)
}
 0x263   :  { %401 = dma.vmem_to_hbm [thread:$0]  %s399_s13, 128, %s843_s7, [#allocation5]  }
 0x264   :  { %465 = dma.done.wait [#allocation5], 128  }
 0x265   :  { %466 = vsyncadd [#allocation5], 4294967168 }
 0x266   :  { %405 = vsyncpa [#allocation5], 1 }

</bundles_post_ra>
